<compile_context>
chip_gen: v6e
topology: v6e:2x2x1
jax: 0.10.0
libtpu: 0.0.40
codegen_flags: <defaults>
</compile_context>

<pallas_src>
import functools

import jax
import jax.numpy as jnp
from jax.experimental import pallas as pl
from jax.experimental.pallas import tpu as pltpu


def _mlp_kernel(x_ref, w1_ref, b1_ref, w2_ref, b2_ref, o_ref):
    # x_ref:  (bm, L)  bf16    w1_ref: (L, H4) bf16    b1_ref: (1, H4) f32
    # w2_ref: (H4, O)  bf16    b2_ref: (1, O)  f32     o_ref:  (bm, O) f32
    h = jnp.dot(x_ref[...], w1_ref[...], preferred_element_type=jnp.float32)
    h = jnp.maximum(h + b1_ref[...], 0.0)                      # bias + ReLU in f32 (VPU)
    y = jnp.dot(h.astype(jnp.bfloat16), w2_ref[...],
                preferred_element_type=jnp.float32)
    o_ref[...] = (y + b2_ref[...]).astype(o_ref.dtype)


@functools.partial(jax.jit, static_argnames=("block_b",))
def seq_mlp_forward(seq, w1, b1, w2, b2, *, block_b=256):
    """seq: (B, 1, L) float32 -> (B, out_dim) float32."""
    x = jnp.squeeze(seq, axis=1)          # (B, L); no-op reshape under jit
    B, L = x.shape
    H4 = w1.shape[1]
    O = w2.shape[1]

    # bf16 operands for the MXU, f32 biases for the accumulator path.
    x16 = x.astype(jnp.bfloat16)
    w1_16 = w1.astype(jnp.bfloat16)
    w2_16 = w2.astype(jnp.bfloat16)
    b1_2d = b1.reshape(1, H4).astype(jnp.float32)
    b2_2d = b2.reshape(1, O).astype(jnp.float32)

    # Remainder handling: pad the batch to a multiple of block_b, slice afterwards.
    n_blocks = pl.cdiv(B, block_b)
    Bp = n_blocks * block_b
    if Bp != B:
        x16 = jnp.pad(x16, ((0, Bp - B), (0, 0)))

    flops = 2 * Bp * (L * H4 + H4 * O)
    bytes_accessed = (Bp * L * 2 + L * H4 * 2 + H4 * O * 2
                      + (H4 + O) * 4 + Bp * O * 4)
    cost = pl.CostEstimate(flops=flops, transcendentals=0,
                           bytes_accessed=bytes_accessed)

    out = pl.pallas_call(
        _mlp_kernel,
        out_shape=jax.ShapeDtypeStruct((Bp, O), jnp.float32),
        grid_spec=pltpu.PrefetchScalarGridSpec(
            num_scalar_prefetch=0,
            grid=(n_blocks,),
            in_specs=[
                pl.BlockSpec((block_b, L), lambda i: (i, 0)),   # x tile over batch
                pl.BlockSpec((L, H4), lambda i: (0, 0)),        # W1 (resident)
                pl.BlockSpec((1, H4), lambda i: (0, 0)),        # b1 (resident)
                pl.BlockSpec((H4, O), lambda i: (0, 0)),        # W2 (resident)
                pl.BlockSpec((1, O), lambda i: (0, 0)),         # b2 (resident)
            ],
            out_specs=pl.BlockSpec((block_b, O), lambda i: (i, 0)),
        ),
        compiler_params=pltpu.CompilerParams(
            dimension_semantics=("parallel",),
        ),
        cost_estimate=cost,
    )(x16, w1_16, b1_2d, w2_16, b2_2d)
    return out[:B]


def init_params(key, max_length, hidden_dim, out_dim):
    """Deterministic PyTorch-style init (uniform(-1/sqrt(fan_in), 1/sqrt(fan_in)))."""
    h4 = hidden_dim * 4
    k1, k2, k3, k4 = jax.random.split(key, 4)
    s1 = 1.0 / jnp.sqrt(max_length)
    s2 = 1.0 / jnp.sqrt(h4)
    # stored as (in, out) = transpose of nn.Linear's (out, in)
    w1 = jax.random.uniform(k1, (max_length, h4), jnp.float32, -s1, s1)
    b1 = jax.random.uniform(k2, (h4,), jnp.float32, -s1, s1)
    w2 = jax.random.uniform(k3, (h4, out_dim), jnp.float32, -s2, s2)
    b2 = jax.random.uniform(k4, (out_dim,), jnp.float32, -s2, s2)
    return w1, b1, w2, b2


def reference_forward(seq, w1, b1, w2, b2):
    # Pure-JAX f32 reference of the PyTorch module semantics.
    x = jnp.squeeze(seq, axis=1)
    h = jnp.maximum(x @ w1 + b1, 0.0)
    return h @ w2 + b2


if __name__ == "__main__":
    # SEQ(seq_type='mlp', hidden_dim=32, out_dim=128, max_length=32):
    #   Linear(32 -> 128) -> ReLU -> Linear(128 -> 128)
    # B=300 is deliberately NOT a multiple of block_b to exercise remainder padding,
    # and pads to 512 -> 2 grid steps (v7x megacore gets both TensorCores busy).
    B, L, HIDDEN, OUT = 300, 32, 32, 128

    key = jax.random.PRNGKey(0)
    k_params, k_x = jax.random.split(key)
    w1, b1, w2, b2 = init_params(k_params, L, HIDDEN, OUT)

    # input matching the PyTorch call: seq of shape (B, 1, L), squeezed inside forward
    seq = jax.random.normal(k_x, (B, 1, L), dtype=jnp.float32)

    out = seq_mlp_forward(seq, w1, b1, w2, b2, block_b=256)
    out = jax.block_until_ready(out)

    ref = reference_forward(seq, w1, b1, w2, b2)
    assert out.shape == (B, OUT)
    # bf16 operands + f32 accumulation vs f32 reference -> loosened tolerance.
    assert jnp.allclose(out, ref, atol=3e-2, rtol=3e-2), "mismatch vs JAX reference"

    print("KERNEL_OK")
</pallas_src>

<mosaic_0001>
module attributes {stable_mosaic.version = 11 : i64} {
  func.func @_mlp_kernel(%arg0: i32, %arg1: memref<256x32xbf16, #tpu.memory_space<vmem>>, %arg2: memref<32x128xbf16, #tpu.memory_space<vmem>>, %arg3: memref<1x128xf32, #tpu.memory_space<vmem>>, %arg4: memref<128x128xbf16, #tpu.memory_space<vmem>>, %arg5: memref<1x128xf32, #tpu.memory_space<vmem>>, %arg6: memref<256x128xf32, #tpu.memory_space<vmem>>) attributes {dimension_semantics = [#tpu.dimension_semantics<parallel>], iteration_bounds = array<i64: 2>, scalar_prefetch = 0 : i64, scratch_operands = 0 : i64, tpu.core_type = #tpu.core_type<tc>, window_params = [{transform_indices = @transform_0, window_bounds = array<i64: 256, 32>}, {pipeline_mode = #tpu.pipeline_mode<synchronous>, transform_indices = @transform_1, window_bounds = array<i64: 32, 128>}, {pipeline_mode = #tpu.pipeline_mode<synchronous>, transform_indices = @transform_2, window_bounds = array<i64: 1, 128>}, {pipeline_mode = #tpu.pipeline_mode<synchronous>, transform_indices = @transform_3, window_bounds = array<i64: 128, 128>}, {pipeline_mode = #tpu.pipeline_mode<synchronous>, transform_indices = @transform_4, window_bounds = array<i64: 1, 128>}, {transform_indices = @transform_5, window_bounds = array<i64: 256, 128>}]} {
    %c0 = arith.constant 0 : index
    %c0_0 = arith.constant 0 : index
    %0 = vector.load %arg1[%c0, %c0_0] : memref<256x32xbf16, #tpu.memory_space<vmem>>, vector<256x32xbf16>
    %c0_1 = arith.constant 0 : index
    %c0_2 = arith.constant 0 : index
    %1 = vector.load %arg2[%c0_1, %c0_2] : memref<32x128xbf16, #tpu.memory_space<vmem>>, vector<32x128xbf16>
    %cst = arith.constant dense<0.000000e+00> : vector<256x128xf32>
    %2 = tpu.matmul %0, %1, %cst {dimension_numbers = #tpu.dot_dimension_numbers<[1], [0], [0], [1], [0, 0, 1, 1], [], []>} : vector<256x32xbf16>, vector<32x128xbf16>, vector<256x128xf32> -> vector<256x128xf32>
    %c0_3 = arith.constant 0 : index
    %c0_4 = arith.constant 0 : index
    %3 = vector.load %arg3[%c0_3, %c0_4] : memref<1x128xf32, #tpu.memory_space<vmem>>, vector<1x128xf32>
    %4 = vector.broadcast %3 : vector<1x128xf32> to vector<256x128xf32>
    %5 = arith.addf %2, %4 : vector<256x128xf32>
    %cst_5 = arith.constant 0.000000e+00 : f32
    %6 = vector.broadcast %cst_5 : f32 to vector<256x128xf32>
    %7 = arith.maximumf %5, %6 : vector<256x128xf32>
    %8 = arith.truncf %7 : vector<256x128xf32> to vector<256x128xbf16>
    %c0_6 = arith.constant 0 : index
    %c0_7 = arith.constant 0 : index
    %9 = vector.load %arg4[%c0_6, %c0_7] : memref<128x128xbf16, #tpu.memory_space<vmem>>, vector<128x128xbf16>
    %cst_8 = arith.constant dense<0.000000e+00> : vector<256x128xf32>
    %10 = tpu.matmul %8, %9, %cst_8 {dimension_numbers = #tpu.dot_dimension_numbers<[1], [0], [0], [1], [0, 0, 1, 1], [], []>} : vector<256x128xbf16>, vector<128x128xbf16>, vector<256x128xf32> -> vector<256x128xf32>
    %c0_9 = arith.constant 0 : index
    %c0_10 = arith.constant 0 : index
    %11 = vector.load %arg5[%c0_9, %c0_10] : memref<1x128xf32, #tpu.memory_space<vmem>>, vector<1x128xf32>
    %12 = vector.broadcast %11 : vector<1x128xf32> to vector<256x128xf32>
    %13 = arith.addf %10, %12 : vector<256x128xf32>
    %c0_11 = arith.constant 0 : index
    %c0_12 = arith.constant 0 : index
    %14 = vector.load %arg6[%c0_11, %c0_12] : memref<256x128xf32, #tpu.memory_space<vmem>>, vector<256x128xf32>
    tpu.vector_store %arg6[%c0_11, %c0_12], %13 {strides = array<i32>} : memref<256x128xf32, #tpu.memory_space<vmem>>, vector<256x128xf32>,
    return
  }
  func.func @transform_0(%arg0: i32) -> (i32, i32) {
    %c0_i32 = arith.constant 0 : i32
    %c0_i32_0 = arith.constant 0 : i32
    return %arg0, %c0_i32 : i32, i32
  }
  func.func @transform_1(%arg0: i32) -> (i32, i32) {
    %c0_i32 = arith.constant 0 : i32
    %c0_i32_0 = arith.constant 0 : i32
    %c0_i32_1 = arith.constant 0 : i32
    return %c0_i32, %c0_i32_0 : i32, i32
  }
  func.func @transform_2(%arg0: i32) -> (i32, i32) {
    %c0_i32 = arith.constant 0 : i32
    %c0_i32_0 = arith.constant 0 : i32
    %c0_i32_1 = arith.constant 0 : i32
    return %c0_i32, %c0_i32_0 : i32, i32
  }
  func.func @transform_3(%arg0: i32) -> (i32, i32) {
    %c0_i32 = arith.constant 0 : i32
    %c0_i32_0 = arith.constant 0 : i32
    %c0_i32_1 = arith.constant 0 : i32
    return %c0_i32, %c0_i32_0 : i32, i32
  }
  func.func @transform_4(%arg0: i32) -> (i32, i32) {
    %c0_i32 = arith.constant 0 : i32
    %c0_i32_0 = arith.constant 0 : i32
    %c0_i32_1 = arith.constant 0 : i32
    return %c0_i32, %c0_i32_0 : i32, i32
  }
  func.func @transform_5(%arg0: i32) -> (i32, i32) {
    %c0_i32 = arith.constant 0 : i32
    %c0_i32_0 = arith.constant 0 : i32
    return %arg0, %c0_i32 : i32, i32
  }
}

</mosaic_0001>

<bundles_post_ra>
// kernel: seq_mlp_forward.1
= control target key start
LH: loop header
LB: loop body
LE: loop exit
PB: predicated region body
PF: predicated region fallthrough
CT: control target
= control target key end

     0   :  { %s1211_s18 = smov 0   ;;  %s1404_s0 = inlined_call_operand.vmem [shape: bf16[512,32], index: 0, kind: input, shape index: {}]   ;;  %s1405_s1 = inlined_call_operand.vmem [shape: bf16[32,128], index: 1, kind: input, shape index: {}]   ;;  %s1406_s2 = inlined_call_operand.vmem [shape: f32[1,128], index: 2, kind: input, shape index: {}]   ;;  %s1407_s3 = inlined_call_operand.vmem [shape: bf16[128,128], index: 3, kind: input, shape index: {}]   ;;  %s1408_s4 = inlined_call_operand.vmem [shape: f32[1,128], index: 4, kind: input, shape index: {}]   ;;  %s1409_s5 = inlined_call_operand.vmem [shape: f32[512,128], index: 5, kind: output, shape index: {}]  }
   0x1 LB: > { %s942_s19 = sadd.s32 4294967295, %s1179_s18   ;;  %p946_p0 = scmp.ge.s32.totalorder %s1179_s18, 1  ;;  %s1179_s18 = sphi %s1211_s18, %s15_s18  }
   0x2   : > { %p188_p1 = scmp.lt.s32.totalorder %s1179_s18, 3 }
   0x4   : > { %p189_p2 = pnand %p946_p0, %p188_p1 }
   0x5   : > { %s947_s22 = sshll.u32 (!%p189_p2), %s942_s19, 5 }
   0x6   : > { %192 = sbr.rel (%p189_p2) target bundleno = 484 (0x1e4), region = 40  ;;  %p217_p3 = scmp.lt.s32.totalorder (!%p189_p2), %s947_s22, 63 }
   0xb   : > { %v1147_v0 = vld [vmem:[%s1405_s1 + $0x8] sm:$0xff]   ;;  %v1148_v1 = vld [vmem:[%s1405_s1] sm:$0xff]   ;;  %v1165_v2 = vld [vmem:[%s1407_s3 + $0x38] sm:$0xff]   ;;  %s1411_s22 = smov (!%p217_p3, %s947_s22), 63  ;;  %vm364_vm0 = vcmask 261120  }
   0xc   : > { %1039 = vmatprep.subr.bf16.mxu0 %v1147_v0  ;;  %v1166_v3 = vld [vmem:[%s1407_s3 + $0x30] sm:$0xff]   ;;  %1123 = vmatprep.subr.bf16.mxu1 %v1165_v2  ;;  %s948_s29 = sshll.u32 %s1411_s22, 2  ;;  %v1167_v4 = vld [vmem:[%s1407_s3 + $0x28] sm:$0xff]   ;;  %v1168_v8 = vld [vmem:[%s1407_s3 + $0x20] sm:$0xff]   ;;  %s950_s24 = sshll.u32 %s1411_s22, 3 }
   0xd   : > { %1040 = vmatpush3.bf16.msra.mxu0 %v1147_v0  ;;  %1131 = vmatpush3.bf16.msra.mxu1 %v1165_v2  ;;  %s1237_s7 = scalar_lea.vmem %s1404_s0, %s948_s29  ;;  %v1169_v11 = vld [vmem:[%s1407_s3 + $0x18] sm:$0xff]   ;;  %v1170_v23 = vld [vmem:[%s1407_s3 + $0x10] sm:$0xff]   ;;  %v1171_v24 = vld [vmem:[%s1407_s3 + $0x8] sm:$0xff]   ;;  %s1335_s29 = scalar_lea.vmem %s1409_s5, %s950_s24 }
   0xe   : > { %1041 = vmatprep.subr.bf16.mxu0 %v1148_v1  ;;  %1124 = vmatprep.subr.bf16.mxu1 %v1166_v3  ;;  %v1149_v5 = vld [vmem:[%s1237_s7] sm:$0xff]   ;;  %v1150_v6 = vld [vmem:[%s1237_s7 + $0x8] sm:$0xff]   ;;  %v1151_v7 = vld [vmem:[%s1237_s7 + $0x10] sm:$0xff]  }
   0xf   : > { %1043 = vmatprep.mubr.msk.bf16.mxu0 %vm364_vm0, %v1149_v5  ;;  %v1152_v9 = vld [vmem:[%s1237_s7 + $0x18] sm:$0xff]   ;;  %v1153_v10 = vld [vmem:[%s1237_s7 + $0x20] sm:$0xff]   ;;  %v1154_v12 = vld [vmem:[%s1237_s7 + $0x28] sm:$0xff]  }
  0x10   : > { %v1155_v13 = vld [vmem:[%s1237_s7 + $0x30] sm:$0xff]   ;;  %v1156_v14 = vld [vmem:[%s1237_s7 + $0x38] sm:$0xff]   ;;  %v1157_v15 = vld [vmem:[%s1237_s7 + $0x40] sm:$0xff]  }
  0x11   : > { %1042 = vmatpush3.bf16.msra.mxu0 %v1148_v1  ;;  %1132 = vmatpush3.bf16.msra.mxu1 %v1166_v3  ;;  %v1158_v16 = vld [vmem:[%s1237_s7 + $0x48] sm:$0xff]   ;;  %v1159_v17 = vld [vmem:[%s1237_s7 + $0x50] sm:$0xff]   ;;  %v1160_v18 = vld [vmem:[%s1237_s7 + $0x58] sm:$0xff]  }
  0x12   : > { %1075 = vmatprep.subr.bf16.mxu0 %v1165_v2  ;;  %1125 = vmatprep.subr.bf16.mxu1 %v1167_v4  ;;  %v1161_v19 = vld [vmem:[%s1237_s7 + $0x60] sm:$0xff]   ;;  %v1162_v20 = vld [vmem:[%s1237_s7 + $0x68] sm:$0xff]   ;;  %v1163_v21 = vld [vmem:[%s1237_s7 + $0x70] sm:$0xff]  }
  0x13   : > { %v1164_v22 = vld [vmem:[%s1237_s7 + $0x78] sm:$0xff]   ;;  %v1172_v25 = vld [vmem:[%s1407_s3] sm:$0xff]  }
  0x14   : > { %1044 = vmatmul.mubr.msk.bf16.vlgmr.msra.gmra.mxu0 %vm364_vm0, %v1150_v6  ;;  %v1292_v28 = vld [vmem:[%s1406_s2] ss:$0 sm:$0xff] }
  0x15   : > { %1047 = vmatprep.mubr.msk.bf16.mxu0 %vm364_vm0, %v1151_v7  ;;  %1076 = vmatpush3.bf16.msra.mxu0 %v1165_v2 }
  0x16   : > { %1077 = vmatprep.subr.bf16.mxu0 %v1166_v3  ;;  %1133 = vmatpush3.bf16.msra.mxu1 %v1167_v4 }
  0x17   : > { %1126 = vmatprep.subr.bf16.mxu1 %v1168_v8 }
  0x19   : > { %1078 = vmatpush3.bf16.msra.mxu0 %v1166_v3 }
  0x1a   : > { %1079 = vmatprep.subr.bf16.mxu0 %v1167_v4  ;;  %1134 = vmatpush3.bf16.msra.mxu1 %v1168_v8 }
  0x1b   : > { %1127 = vmatprep.subr.bf16.mxu1 %v1169_v11 }
  0x1c   : > { %1048 = vmatmul.mubr.msk.bf16.gmra.mxu0 %vm364_vm0, %v1152_v9 }
  0x1d   : > { %1051 = vmatprep.mubr.msk.bf16.mxu0 %vm364_vm0, %v1153_v10  ;;  %1080 = vmatpush3.bf16.msra.mxu0 %v1167_v4 }
  0x1e   : > { %1081 = vmatprep.subr.bf16.mxu0 %v1168_v8  ;;  %1135 = vmatpush3.bf16.msra.mxu1 %v1169_v11 }
  0x1f   : > { %1128 = vmatprep.subr.bf16.mxu1 %v1170_v23 }
  0x21   : > { %1082 = vmatpush3.bf16.msra.mxu0 %v1168_v8 }
  0x22   : > { %1083 = vmatprep.subr.bf16.mxu0 %v1169_v11  ;;  %1136 = vmatpush3.bf16.msra.mxu1 %v1170_v23 }
  0x23   : > { %1129 = vmatprep.subr.bf16.mxu1 %v1171_v24 }
  0x24   : > { %1052 = vmatmul.mubr.msk.bf16.gmra.mxu0 %vm364_vm0, %v1154_v12 }
  0x25   : > { %1055 = vmatprep.mubr.msk.bf16.mxu0 %vm364_vm0, %v1155_v13  ;;  %1084 = vmatpush3.bf16.msra.mxu0 %v1169_v11 }
  0x26   : > { %1085 = vmatprep.subr.bf16.mxu0 %v1170_v23  ;;  %1137 = vmatpush3.bf16.msra.mxu1 %v1171_v24 }
  0x27   : > { %1130 = vmatprep.subr.bf16.mxu1 %v1172_v25 }
  0x29   : > { %1086 = vmatpush3.bf16.msra.mxu0 %v1170_v23 }
  0x2a   : > { %1087 = vmatprep.subr.bf16.mxu0 %v1171_v24  ;;  %1138 = vmatpush3.bf16.msra.mxu1 %v1172_v25 }
  0x2c   : > { %1056 = vmatmul.mubr.msk.bf16.gmra.mxu0 %vm364_vm0, %v1156_v14 }
  0x2d   : > { %1059 = vmatprep.mubr.msk.bf16.mxu0 %vm364_vm0, %v1157_v15  ;;  %1088 = vmatpush3.bf16.msra.mxu0 %v1171_v24 }
  0x2e   : > { %1089 = vmatprep.subr.bf16.mxu0 %v1172_v25 }
  0x31   : > { %1090 = vmatpush3.bf16.msra.mxu0 %v1172_v25 }
  0x34   : > { %1060 = vmatmul.mubr.msk.bf16.gmra.mxu0 %vm364_vm0, %v1158_v16 }
  0x35   : > { %1063 = vmatprep.mubr.msk.bf16.mxu0 %vm364_vm0, %v1159_v17 }
  0x3c   : > { %1064 = vmatmul.mubr.msk.bf16.gmra.mxu0 %vm364_vm0, %v1160_v18 }
  0x3d   : > { %1067 = vmatprep.mubr.msk.bf16.mxu0 %vm364_vm0, %v1161_v19 }
  0x44   : > { %1068 = vmatmul.mubr.msk.bf16.gmra.mxu0 %vm364_vm0, %v1162_v20 }
  0x45   : > { %1071 = vmatprep.mubr.msk.bf16.mxu0 %vm364_vm0, %v1163_v21 }
  0x4c   : > { %1072 = vmatmul.mubr.msk.bf16.gmra.mxu0 %vm364_vm0, %v1164_v22 }
  0xd4   : > { %v1045_v26 = vpop.f32.mrf.mxu0 }
  0xd5   : > { %v456_v32 = vadd.f32 %v1045_v26, %v1292_v28 }
  0xd6   : > { %v447_v27 = vpop.f32.mrf.mxu0 }
  0xd7   : > { %v448_v30 = vadd.f32 %v1292_v28, %v447_v27  ;;  %v576_v39 = vmax.f32 %v456_v32, 0.0 }
  0xd8   : > { %v1046_v29 = vpop.f32.mrf.mxu0 }
  0xd9   : > { %v459_v31 = vadd.f32 %v1046_v29, %v1292_v28  ;;  %v574_v37 = vmax.f32 %v448_v30, 0.0 }
  0xda   : > { %v450_v33 = vpop.f32.mrf.mxu0 }
  0xdb   : > { %v451_v34 = vadd.f32 %v1292_v28, %v450_v33  ;;  %v577_v35 = vmax.f32 %v459_v31, 0.0 }
  0xdc   : > { %v1049_v36 = vpop.f32.mrf.mxu0 }
  0xdd   : > { %v575_v38 = vmax.f32 %v451_v34, 0.0  ;;  %v607_v42 = vpack.c.bf16 %v577_v35, %v576_v39  ;;  %v472_v46 = vadd.f32 %v1049_v36, %v1292_v28 }
  0xde   : > { %v463_v40 = vpop.f32.mrf.mxu0 }
  0xdf   : > { %v606_v41 = vpack.c.bf16 %v575_v38, %v574_v37  ;;  %v464_v44 = vadd.f32 %v1292_v28, %v463_v40  ;;  %v580_v53 = vmax.f32 %v472_v46, 0.0 }
  0xe0   : > { %v1050_v43 = vpop.f32.mrf.mxu0 }
  0xe1   : > { %v475_v45 = vadd.f32 %v1050_v43, %v1292_v28  ;;  %1091 = vmatprep.mubr.bf16.mxu0 %v606_v41  ;;  %v578_v51 = vmax.f32 %v464_v44, 0.0 }
  0xe2   : > { %v466_v47 = vpop.f32.mrf.mxu0  ;;  %1092 = vmatmul.mubr.bf16.vlgmr.msra.gmra.mxu0 %v607_v42 }
  0xe3   : > { %v467_v48 = vadd.f32 %v1292_v28, %v466_v47  ;;  %v581_v49 = vmax.f32 %v475_v45, 0.0 }
  0xe4   : > { %v1053_v50 = vpop.f32.mrf.mxu0 }
  0xe5   : > { %v579_v52 = vmax.f32 %v467_v48, 0.0  ;;  %v609_v56 = vpack.c.bf16 %v581_v49, %v580_v53  ;;  %v488_v60 = vadd.f32 %v1053_v50, %v1292_v28 }
  0xe6   : > { %v479_v54 = vpop.f32.mrf.mxu0 }
  0xe7   : > { %v608_v55 = vpack.c.bf16 %v579_v52, %v578_v51  ;;  %v480_v58 = vadd.f32 %v1292_v28, %v479_v54  ;;  %v584_v3 = vmax.f32 %v488_v60, 0.0 }
  0xe8   : > { %v1054_v57 = vpop.f32.mrf.mxu0 }
  0xe9   : > { %v491_v59 = vadd.f32 %v1054_v57, %v1292_v28  ;;  %1095 = vmatprep.mubr.bf16.mxu1 %v608_v55  ;;  %v582_v1 = vmax.f32 %v480_v58, 0.0 }
  0xea   : > { %v482_v61 = vpop.f32.mrf.mxu0  ;;  %1096 = vmatmul.mubr.bf16.vlgmr.msra.gmra.mxu1 %v609_v56 }
  0xeb   : > { %v483_v62 = vadd.f32 %v1292_v28, %v482_v61  ;;  %v585_v63 = vmax.f32 %v491_v59, 0.0 }
  0xec   : > { %v1057_v0 = vpop.f32.mrf.mxu0 }
  0xed   : > { %v583_v2 = vmax.f32 %v483_v62, 0.0  ;;  %v611_v6 = vpack.c.bf16 %v585_v63, %v584_v3  ;;  %v504_v10 = vadd.f32 %v1057_v0, %v1292_v28 }
  0xee   : > { %v495_v4 = vpop.f32.mrf.mxu0 }
  0xef   : > { %v610_v5 = vpack.c.bf16 %v583_v2, %v582_v1  ;;  %v496_v8 = vadd.f32 %v1292_v28, %v495_v4  ;;  %v588_v17 = vmax.f32 %v504_v10, 0.0 }
  0xf0   : > { %v1058_v7 = vpop.f32.mrf.mxu0 }
  0xf1   : > { %v507_v9 = vadd.f32 %v1058_v7, %v1292_v28  ;;  %1099 = vmatprep.mubr.bf16.mxu1 %v610_v5  ;;  %v586_v15 = vmax.f32 %v496_v8, 0.0 }
  0xf2   : > { %v498_v11 = vpop.f32.mrf.mxu0  ;;  %1100 = vmatmul.mubr.bf16.gmra.mxu1 %v611_v6 }
  0xf3   : > { %v499_v12 = vadd.f32 %v1292_v28, %v498_v11  ;;  %v589_v13 = vmax.f32 %v507_v9, 0.0 }
  0xf4   : > { %v1061_v14 = vpop.f32.mrf.mxu0 }
  0xf5   : > { %v587_v16 = vmax.f32 %v499_v12, 0.0  ;;  %v613_v20 = vpack.c.bf16 %v589_v13, %v588_v17  ;;  %v520_v24 = vadd.f32 %v1061_v14, %v1292_v28  ;;  %v1330_v12 = vld [vmem:[%s1408_s4] ss:$0 sm:$0xff] }
  0xf6   : > { %v511_v18 = vpop.f32.mrf.mxu0 }
  0xf7   : > { %v612_v19 = vpack.c.bf16 %v587_v16, %v586_v15  ;;  %v512_v22 = vadd.f32 %v1292_v28, %v511_v18  ;;  %v592_v32 = vmax.f32 %v520_v24, 0.0 }
  0xf8   : > { %v1062_v21 = vpop.f32.mrf.mxu0 }
  0xf9   : > { %v523_v23 = vadd.f32 %v1062_v21, %v1292_v28  ;;  %1103 = vmatprep.mubr.bf16.mxu1 %v612_v19  ;;  %v590_v30 = vmax.f32 %v512_v22, 0.0 }
  0xfa   : > { %v514_v25 = vpop.f32.mrf.mxu0  ;;  %1104 = vmatmul.mubr.bf16.gmra.mxu1 %v613_v20 }
  0xfb   : > { %v515_v26 = vadd.f32 %v1292_v28, %v514_v25  ;;  %v593_v27 = vmax.f32 %v523_v23, 0.0 }
  0xfc   : > { %v1065_v29 = vpop.f32.mrf.mxu0 }
  0xfd   : > { %v591_v31 = vmax.f32 %v515_v26, 0.0  ;;  %v615_v35 = vpack.c.bf16 %v593_v27, %v592_v32  ;;  %v536_v39 = vadd.f32 %v1065_v29, %v1292_v28 }
  0xfe   : > { %v527_v33 = vpop.f32.mrf.mxu0 }
  0xff   : > { %v614_v34 = vpack.c.bf16 %v591_v31, %v590_v30  ;;  %v528_v37 = vadd.f32 %v1292_v28, %v527_v33  ;;  %v596_v46 = vmax.f32 %v536_v39, 0.0 }
 0x100   : > { %v1066_v36 = vpop.f32.mrf.mxu0 }
 0x101   : > { %v539_v38 = vadd.f32 %v1066_v36, %v1292_v28  ;;  %1107 = vmatprep.mubr.bf16.mxu1 %v614_v34  ;;  %v594_v44 = vmax.f32 %v528_v37, 0.0 }
 0x102   : > { %v530_v40 = vpop.f32.mrf.mxu0  ;;  %1108 = vmatmul.mubr.bf16.gmra.mxu1 %v615_v35 }
 0x103   : > { %v531_v41 = vadd.f32 %v1292_v28, %v530_v40  ;;  %v597_v42 = vmax.f32 %v539_v38, 0.0 }
 0x104   : > { %v1069_v43 = vpop.f32.mrf.mxu0 }
 0x105   : > { %v595_v45 = vmax.f32 %v531_v41, 0.0  ;;  %v617_v49 = vpack.c.bf16 %v597_v42, %v596_v46  ;;  %v552_v53 = vadd.f32 %v1069_v43, %v1292_v28 }
 0x106   : > { %v543_v47 = vpop.f32.mrf.mxu0 }
 0x107   : > { %v616_v48 = vpack.c.bf16 %v595_v45, %v594_v44  ;;  %v544_v51 = vadd.f32 %v1292_v28, %v543_v47  ;;  %v600_v60 = vmax.f32 %v552_v53, 0.0 }
 0x108   : > { %v1070_v50 = vpop.f32.mrf.mxu0 }
 0x109   : > { %v555_v52 = vadd.f32 %v1070_v50, %v1292_v28  ;;  %1111 = vmatprep.mubr.bf16.mxu1 %v616_v48  ;;  %v598_v58 = vmax.f32 %v544_v51, 0.0 }
 0x10a   : > { %v546_v54 = vpop.f32.mrf.mxu0  ;;  %1112 = vmatmul.mubr.bf16.gmra.mxu1 %v617_v49 }
 0x10b   : > { %v547_v55 = vadd.f32 %v1292_v28, %v546_v54  ;;  %v601_v56 = vmax.f32 %v555_v52, 0.0 }
 0x10c   : > { %v1073_v57 = vpop.f32.mrf.mxu0 }
 0x10d   : > { %v599_v59 = vmax.f32 %v547_v55, 0.0  ;;  %v619_v63 = vpack.c.bf16 %v601_v56, %v600_v60  ;;  %v568_v3 = vadd.f32 %v1073_v57, %v1292_v28 }
 0x10e   : > { %v559_v61 = vpop.f32.mrf.mxu0 }
 0x10f   : > { %v618_v62 = vpack.c.bf16 %v599_v59, %v598_v58  ;;  %v560_v1 = vadd.f32 %v1292_v28, %v559_v61  ;;  %v604_v9 = vmax.f32 %v568_v3, 0.0 }
 0x110   : > { %v1074_v0 = vpop.f32.mrf.mxu0 }
 0x111   : > { %v571_v2 = vadd.f32 %v1074_v0, %v1292_v28  ;;  %1115 = vmatprep.mubr.bf16.mxu1 %v618_v62  ;;  %v602_v7 = vmax.f32 %v560_v1, 0.0 }
 0x112   : > { %v562_v4 = vpop.f32.mrf.mxu0  ;;  %1116 = vmatmul.mubr.bf16.gmra.mxu1 %v619_v63 }
 0x113   : > { %v563_v5 = vadd.f32 %v1292_v28, %v562_v4  ;;  %v605_v6 = vmax.f32 %v571_v2, 0.0 }
 0x115   : > { %v603_v8 = vmax.f32 %v563_v5, 0.0  ;;  %v621_v11 = vpack.c.bf16 %v605_v6, %v604_v9 }
 0x117   : > { %v620_v10 = vpack.c.bf16 %v603_v8, %v602_v7 }
 0x119   : > { %1119 = vmatprep.mubr.bf16.mxu1 %v620_v10 }
 0x11a   : > { %1120 = vmatmul.mubr.bf16.gmra.mxu1 %v621_v11 }
 0x1a2   : > { %v1093_v28 = vpop.f32.mrf.mxu0 }
 0x1a3   : > { %v736_v13 = vadd.f32 %v1093_v28, %v1330_v12 }
 0x1a4   : > { %v727_v14 = vpop.f32.mrf.mxu0 }
 0x1a5   : > { %856 = vst [vmem:[%s1335_s29 + $0x10] sm:$0xff] %v736_v13  ;;  %v728_v15 = vadd.f32 %v1330_v12, %v727_v14 }
 0x1a6   : > { %v1094_v16 = vpop.f32.mrf.mxu0 }
 0x1a7   : > { %854 = vst [vmem:[%s1335_s29] sm:$0xff] %v728_v15  ;;  %v739_v17 = vadd.f32 %v1094_v16, %v1330_v12 }
 0x1a8   : > { %v730_v18 = vpop.f32.mrf.mxu0 }
 0x1a9   : > { %857 = vst [vmem:[%s1335_s29 + $0x18] sm:$0xff] %v739_v17  ;;  %v731_v19 = vadd.f32 %v1330_v12, %v730_v18 }
 0x1aa   : > { %v1097_v20 = vpop.f32.mrf.mxu1 }
 0x1ab   : > { %855 = vst [vmem:[%s1335_s29 + $0x8] sm:$0xff] %v731_v19  ;;  %v752_v21 = vadd.f32 %v1097_v20, %v1330_v12 }
 0x1ac   : > { %v743_v22 = vpop.f32.mrf.mxu1 }
 0x1ad   : > { %860 = vst [vmem:[%s1335_s29 + $0x30] sm:$0xff] %v752_v21  ;;  %v744_v23 = vadd.f32 %v1330_v12, %v743_v22 }
 0x1ae   : > { %v1098_v24 = vpop.f32.mrf.mxu1 }
 0x1af   : > { %858 = vst [vmem:[%s1335_s29 + $0x20] sm:$0xff] %v744_v23  ;;  %v755_v25 = vadd.f32 %v1098_v24, %v1330_v12 }
 0x1b0   : > { %v746_v26 = vpop.f32.mrf.mxu1 }
 0x1b1   : > { %861 = vst [vmem:[%s1335_s29 + $0x38] sm:$0xff] %v755_v25  ;;  %v747_v27 = vadd.f32 %v1330_v12, %v746_v26 }
 0x1b2   : > { %v1101_v29 = vpop.f32.mrf.mxu1 }
 0x1b3   : > { %859 = vst [vmem:[%s1335_s29 + $0x28] sm:$0xff] %v747_v27  ;;  %v768_v30 = vadd.f32 %v1101_v29, %v1330_v12 }
 0x1b4   : > { %v759_v31 = vpop.f32.mrf.mxu1 }
 0x1b5   : > { %864 = vst [vmem:[%s1335_s29 + $0x50] sm:$0xff] %v768_v30  ;;  %v760_v32 = vadd.f32 %v1330_v12, %v759_v31 }
 0x1b6   : > { %v1102_v33 = vpop.f32.mrf.mxu1 }
 0x1b7   : > { %862 = vst [vmem:[%s1335_s29 + $0x40] sm:$0xff] %v760_v32  ;;  %v771_v34 = vadd.f32 %v1102_v33, %v1330_v12 }
 0x1b8   : > { %v762_v35 = vpop.f32.mrf.mxu1 }
 0x1b9   : > { %865 = vst [vmem:[%s1335_s29 + $0x58] sm:$0xff] %v771_v34  ;;  %v763_v36 = vadd.f32 %v1330_v12, %v762_v35 }
 0x1ba   : > { %v1105_v37 = vpop.f32.mrf.mxu1 }
 0x1bb   : > { %863 = vst [vmem:[%s1335_s29 + $0x48] sm:$0xff] %v763_v36  ;;  %v784_v38 = vadd.f32 %v1105_v37, %v1330_v12 }
 0x1bc   : > { %v775_v39 = vpop.f32.mrf.mxu1 }
 0x1bd   : > { %868 = vst [vmem:[%s1335_s29 + $0x70] sm:$0xff] %v784_v38  ;;  %v776_v40 = vadd.f32 %v1330_v12, %v775_v39 }
 0x1be   : > { %v1106_v41 = vpop.f32.mrf.mxu1 }
 0x1bf   : > { %866 = vst [vmem:[%s1335_s29 + $0x60] sm:$0xff] %v776_v40  ;;  %v787_v42 = vadd.f32 %v1106_v41, %v1330_v12 }
 0x1c0   : > { %v778_v43 = vpop.f32.mrf.mxu1 }
 0x1c1   : > { %869 = vst [vmem:[%s1335_s29 + $0x78] sm:$0xff] %v787_v42  ;;  %v779_v44 = vadd.f32 %v1330_v12, %v778_v43 }
 0x1c2   : > { %v1109_v45 = vpop.f32.mrf.mxu1 }
 0x1c3   : > { %867 = vst [vmem:[%s1335_s29 + $0x68] sm:$0xff] %v779_v44  ;;  %v800_v46 = vadd.f32 %v1109_v45, %v1330_v12 }
 0x1c4   : > { %v791_v47 = vpop.f32.mrf.mxu1 }
 0x1c5   : > { %872 = vst [vmem:[%s1335_s29 + $0x90] sm:$0xff] %v800_v46  ;;  %v792_v48 = vadd.f32 %v1330_v12, %v791_v47 }
 0x1c6   : > { %v1110_v49 = vpop.f32.mrf.mxu1 }
 0x1c7   : > { %870 = vst [vmem:[%s1335_s29 + $0x80] sm:$0xff] %v792_v48  ;;  %v803_v50 = vadd.f32 %v1110_v49, %v1330_v12 }
 0x1c8   : > { %v794_v51 = vpop.f32.mrf.mxu1 }
 0x1c9   : > { %873 = vst [vmem:[%s1335_s29 + $0x98] sm:$0xff] %v803_v50  ;;  %v795_v52 = vadd.f32 %v1330_v12, %v794_v51 }
 0x1ca   : > { %v1113_v53 = vpop.f32.mrf.mxu1 }
 0x1cb   : > { %871 = vst [vmem:[%s1335_s29 + $0x88] sm:$0xff] %v795_v52  ;;  %v816_v54 = vadd.f32 %v1113_v53, %v1330_v12 }
 0x1cc   : > { %v807_v55 = vpop.f32.mrf.mxu1 }
 0x1cd   : > { %876 = vst [vmem:[%s1335_s29 + $0xb0] sm:$0xff] %v816_v54  ;;  %v808_v56 = vadd.f32 %v1330_v12, %v807_v55 }
 0x1ce   : > { %v1114_v57 = vpop.f32.mrf.mxu1 }
 0x1cf   : > { %874 = vst [vmem:[%s1335_s29 + $0xa0] sm:$0xff] %v808_v56  ;;  %v819_v58 = vadd.f32 %v1114_v57, %v1330_v12 }
 0x1d0   : > { %v810_v59 = vpop.f32.mrf.mxu1 }
 0x1d1   : > { %877 = vst [vmem:[%s1335_s29 + $0xb8] sm:$0xff] %v819_v58  ;;  %v811_v60 = vadd.f32 %v1330_v12, %v810_v59 }
 0x1d2   : > { %v1117_v61 = vpop.f32.mrf.mxu1 }
 0x1d3   : > { %875 = vst [vmem:[%s1335_s29 + $0xa8] sm:$0xff] %v811_v60  ;;  %v832_v62 = vadd.f32 %v1117_v61, %v1330_v12 }
 0x1d4   : > { %v823_v63 = vpop.f32.mrf.mxu1 }
 0x1d5   : > { %880 = vst [vmem:[%s1335_s29 + $0xd0] sm:$0xff] %v832_v62  ;;  %v824_v0 = vadd.f32 %v1330_v12, %v823_v63 }
 0x1d6   : > { %v1118_v1 = vpop.f32.mrf.mxu1 }
 0x1d7   : > { %878 = vst [vmem:[%s1335_s29 + $0xc0] sm:$0xff] %v824_v0  ;;  %v835_v2 = vadd.f32 %v1118_v1, %v1330_v12 }
 0x1d8   : > { %v826_v3 = vpop.f32.mrf.mxu1 }
 0x1d9   : > { %881 = vst [vmem:[%s1335_s29 + $0xd8] sm:$0xff] %v835_v2  ;;  %v827_v4 = vadd.f32 %v1330_v12, %v826_v3 }
 0x1da   : > { %v1121_v5 = vpop.f32.mrf.mxu1 }
 0x1db   : > { %879 = vst [vmem:[%s1335_s29 + $0xc8] sm:$0xff] %v827_v4  ;;  %v848_v6 = vadd.f32 %v1121_v5, %v1330_v12 }
 0x1dc   : > { %v839_v7 = vpop.f32.mrf.mxu1 }
 0x1dd   : > { %884 = vst [vmem:[%s1335_s29 + $0xf0] sm:$0xff] %v848_v6  ;;  %v840_v8 = vadd.f32 %v1330_v12, %v839_v7 }
 0x1de   : > { %v1122_v9 = vpop.f32.mrf.mxu1 }
 0x1df   : > { %882 = vst [vmem:[%s1335_s29 + $0xe0] sm:$0xff] %v840_v8  ;;  %v851_v10 = vadd.f32 %v1122_v9, %v1330_v12 }
 0x1e0   : > { %v842_v11 = vpop.f32.mrf.mxu1 }
 0x1e1   : > { %885 = vst [vmem:[%s1335_s29 + $0xf8] sm:$0xff] %v851_v10  ;;  %v843_v28 = vadd.f32 %v1330_v12, %v842_v11 }
 0x1e3   : > { %883 = vst [vmem:[%s1335_s29 + $0xe8] sm:$0xff] %v843_v28 }
 0x1e4 PF: > { %s15_s18 = sadd.s32 1, %s1179_s18  }
 0x1e5   : > { %p12_p4 = scmp.ge.s32.totalorder %s15_s18, 4  }
 0x1e7   :  { %14 = sbr.rel (!%p12_p4) target bundleno = 1 (0x1), region = 70 }

</bundles_post_ra>
